<compile_context>
chip_gen: v7x
topology: tpu7x:2x2x1
jax: 0.10.0
libtpu: 0.0.40
codegen_flags: <defaults>
</compile_context>

<pallas_src>
import functools

import jax
import jax.numpy as jnp
from jax.experimental import pallas as pl
from jax.experimental.pallas import tpu as pltpu


def _bottleneck_kernel(
    x_ref,      # (Cin, NHW)           f32  (batch folded into lanes)
    w1_ref,     # (CmidP, Cin)         bf16
    w2_ref,     # (3, CmidP, 3*CmidP)  bf16  [kh][out, (kw, cin)]
    w3_ref,     # (Cout, CmidP)        bf16
    sb_ref,     # (6*Cpack, 1)         f32  packed scale/bias (s1,b1,s2,b2,s3,b3)
    m_ref,      # (9, NHW)             f32  per-tap boundary masks
    out_ref,    # (Cout, NHW)          f32
    *, W, NHW, Cin, CmidP, Cpack,
):
    x = x_ref[...]                                            # (Cin, NHW) f32

    # Unpack the folded-BN scale/bias segments (all static slices).
    s1 = sb_ref[0 * Cpack:0 * Cpack + Cin]
    b1 = sb_ref[1 * Cpack:1 * Cpack + Cin]
    s2 = sb_ref[2 * Cpack:2 * Cpack + CmidP]
    b2 = sb_ref[3 * Cpack:3 * Cpack + CmidP]
    s3 = sb_ref[4 * Cpack:4 * Cpack + CmidP]
    b3 = sb_ref[5 * Cpack:5 * Cpack + CmidP]

    # ---- bn1 -> relu -> conv1 (1x1): (CmidP,Cin) @ (Cin,NHW) ----
    a1 = jnp.maximum(x * s1 + b1, 0.0)
    t = jnp.dot(w1_ref[...], a1.astype(jnp.bfloat16),
                preferred_element_type=jnp.float32)           # (CmidP, NHW)

    # ---- bn2 -> relu ----
    u = jnp.maximum(t * s2 + b2, 0.0)                         # (CmidP, NHW) f32

    # ---- conv2 (3x3, pad=1, stride=1): 3 accumulated im2col matmuls over kh.
    # Only 3 taps are live at a time; each tap is bf16 before the concat.
    c2 = None
    for kh in range(3):
        taps = []
        for kw in range(3):
            k = kh * 3 + kw
            dh, dw = kh - 1, kw - 1
            off = dh * W + dw
            if off == 0:
                tap = u                                        # no mask needed
            else:
                tap = pltpu.roll(u, shift=(-off) % NHW, axis=1) * m_ref[k:k + 1, :]
            taps.append(tap.astype(jnp.bfloat16))
        tap3 = jnp.concatenate(taps, axis=0)                   # (3*CmidP, NHW) bf16
        part = jnp.dot(w2_ref[kh], tap3,
                       preferred_element_type=jnp.float32)     # (CmidP, NHW)
        c2 = part if c2 is None else c2 + part

    # ---- bn3 -> relu -> conv3 (1x1): (Cout,CmidP) @ (CmidP,NHW) ----
    a3 = jnp.maximum(c2 * s3 + b3, 0.0)
    v = jnp.dot(w3_ref[...], a3.astype(jnp.bfloat16),
                preferred_element_type=jnp.float32)            # (Cout, NHW)

    # ---- residual add (identity: Cin == Cout, stride == 1) ----
    out_ref[...] = (v + x).astype(out_ref.dtype)


def bottleneck_v2_forward(x_nchw, params):
    """x_nchw: (N, Cin, H, W) float32. Returns (N, Cout, H, W) float32."""
    N, Cin, H, W = x_nchw.shape
    w1, w2, w3 = params["w1"], params["w2"], params["w3"]
    Cmid = w1.shape[0]
    Cout = w3.shape[0]
    assert Cin == Cout, "identity residual requires dim_in == dim_out"
    HW = H * W
    NHW = N * HW
    assert NHW % 128 == 0, "N*H*W must be a lane multiple (pad in wrapper otherwise)"

    # Pad mid channels to a sublane multiple (padded rows/cols are zero).
    CmidP = ((Cmid + 7) // 8) * 8
    pm = CmidP - Cmid
    Cpack = ((max(Cin, CmidP) + 7) // 8) * 8

    # Batch folded into lanes: lane = n*HW + h*W + w (layout plumbing only).
    x_flat = jnp.transpose(x_nchw, (1, 0, 2, 3)).reshape(Cin, NHW)

    # Kernel-ready weights (bf16, cast once).
    w1_b = jnp.pad(w1, ((0, pm), (0, 0))).astype(jnp.bfloat16)           # (CmidP, Cin)
    w2_p = jnp.pad(w2, ((0, pm), (0, pm), (0, 0), (0, 0)))               # (CmidP, CmidP, 3, 3) OIHW
    # layout [kh][out, (kw, cin)] so w2_ref[kh] matches the per-kh tap concat.
    w2_b = jnp.transpose(w2_p, (2, 0, 3, 1)).reshape(3, CmidP, 3 * CmidP).astype(jnp.bfloat16)
    w3_b = jnp.pad(w3, ((0, 0), (0, pm))).astype(jnp.bfloat16)           # (Cout, CmidP)

    # Pack the six folded-BN scale/bias vectors into ONE (6*Cpack, 1) input.
    def seg(a):
        a = a.astype(jnp.float32)
        return jnp.pad(a, (0, Cpack - a.shape[0]))
    sb = jnp.concatenate([seg(params["s1"]), seg(params["b1"]),
                          seg(params["s2"]), seg(params["b2"]),
                          seg(params["s3"]), seg(params["b3"])]).reshape(6 * Cpack, 1)

    # Precompute the 9 boundary masks from PER-IMAGE coordinates so the lane
    # rolls cannot leak pixels across image boundaries of the folded batch.
    lane = jnp.arange(NHW, dtype=jnp.int32)
    local = lane % HW
    wi = local % W
    hi = local // W
    mask_rows = []
    for kh in range(3):
        for kw in range(3):
            dh, dw = kh - 1, kw - 1
            valid = ((wi + dw >= 0) & (wi + dw < W)
                     & (hi + dh >= 0) & (hi + dh < H))
            mask_rows.append(valid)
    masks = jnp.stack(mask_rows).astype(jnp.float32)                      # (9, NHW)

    kernel = functools.partial(_bottleneck_kernel, W=W, NHW=NHW,
                               Cin=Cin, CmidP=CmidP, Cpack=Cpack)
    full = lambda shape: pl.BlockSpec(shape, lambda i: (0,) * len(shape))

    out_flat = pl.pallas_call(
        kernel,
        out_shape=jax.ShapeDtypeStruct((Cout, NHW), jnp.float32),
        grid_spec=pltpu.PrefetchScalarGridSpec(
            num_scalar_prefetch=0,
            grid=(1,),
            in_specs=[
                full((Cin, NHW)),
                full((CmidP, Cin)),
                full((3, CmidP, 3 * CmidP)),
                full((Cout, CmidP)),
                full((6 * Cpack, 1)),
                full((9, NHW)),
            ],
            out_specs=full((Cout, NHW)),
        ),
        compiler_params=pltpu.CompilerParams(
            dimension_semantics=("arbitrary",),
            vmem_limit_bytes=32 * 1024 * 1024),
    )(x_flat, w1_b, w2_b, w3_b, sb, masks)

    return jnp.transpose(out_flat.reshape(Cout, N, H, W), (1, 0, 2, 3))


def make_params(key, dim_in, dim_out):
    """Deterministic synthetic parameters (inference BN folded to scale/bias)."""
    dim_mid = dim_out // 4
    ks = jax.random.split(key, 12)
    eps = 1e-5

    def fold_bn(kg, kb, km, kv, c):
        gamma = 1.0 + 0.1 * jax.random.normal(kg, (c,), jnp.float32)
        beta = 0.1 * jax.random.normal(kb, (c,), jnp.float32)
        running_mean = 0.1 * jax.random.normal(km, (c,), jnp.float32)
        running_var = jnp.abs(1.0 + 0.1 * jax.random.normal(kv, (c,), jnp.float32))
        scale = gamma / jnp.sqrt(running_var + eps)
        bias = beta - running_mean * scale
        return scale, bias

    s1, b1 = fold_bn(ks[0], ks[1], ks[2], ks[3], dim_in)
    s2, b2 = fold_bn(ks[4], ks[5], ks[6], ks[7], dim_mid)
    s3, b3 = fold_bn(ks[8], ks[9], ks[10], ks[11], dim_mid)

    kw = jax.random.split(jax.random.fold_in(key, 1), 3)
    # Conv weights in PyTorch (out, in[, kh, kw]) order.
    w1 = 0.1 * jax.random.normal(kw[0], (dim_mid, dim_in), jnp.float32)
    w2 = 0.1 * jax.random.normal(kw[1], (dim_mid, dim_mid, 3, 3), jnp.float32)
    w3 = 0.1 * jax.random.normal(kw[2], (dim_out, dim_mid), jnp.float32)

    return dict(w1=w1, w2=w2, w3=w3, s1=s1, b1=b1, s2=s2, b2=b2, s3=s3, b3=b3)


def _reference_forward(x, p):
    """Pure-JAX/XLA reference of the same folded-BN forward (all f32)."""
    def bn_relu(z, s, b):
        return jnp.maximum(z * s[None, :, None, None] + b[None, :, None, None], 0.0)

    a1 = bn_relu(x, p["s1"], p["b1"])
    t = jnp.einsum("oi,nihw->nohw", p["w1"], a1)
    u = bn_relu(t, p["s2"], p["b2"])
    c2 = jax.lax.conv_general_dilated(
        u, p["w2"], window_strides=(1, 1), padding=((1, 1), (1, 1)),
        dimension_numbers=("NCHW", "OIHW", "NCHW"))
    a3 = bn_relu(c2, p["s3"], p["b3"])
    v = jnp.einsum("oi,nihw->nohw", p["w3"], a3)
    return v + x


if __name__ == "__main__":
    key = jax.random.PRNGKey(0)
    N, C, H, W = 2, 16, 16, 16          # dim_in = dim_out = 16 -> dim_mid = 4
    kx, kp = jax.random.split(key)
    x = jax.random.normal(kx, (N, C, H, W), jnp.float32)
    params = make_params(kp, dim_in=C, dim_out=C)

    out = bottleneck_v2_forward(x, params)
    jax.block_until_ready(out)
    assert out.shape == (N, C, H, W)

    ref = _reference_forward(x, params)
    max_err = float(jnp.max(jnp.abs(out - ref)))
    assert max_err < 1e-1, f"mismatch vs reference: max abs err = {max_err}"
    print("KERNEL_OK")
</pallas_src>

<mosaic_0001>
module attributes {stable_mosaic.version = 11 : i64} {
  func.func @_bottleneck_kernel(%arg0: i32, %arg1: memref<16x512xf32, #tpu.memory_space<vmem>>, %arg2: memref<8x16xbf16, #tpu.memory_space<vmem>>, %arg3: memref<3x8x24xbf16, #tpu.memory_space<vmem>>, %arg4: memref<16x8xbf16, #tpu.memory_space<vmem>>, %arg5: memref<96x1xf32, #tpu.memory_space<vmem>>, %arg6: memref<9x512xf32, #tpu.memory_space<vmem>>, %arg7: memref<16x512xf32, #tpu.memory_space<vmem>>) attributes {dimension_semantics = [#tpu.dimension_semantics<arbitrary>], iteration_bounds = array<i64: 1>, scalar_prefetch = 0 : i64, scratch_operands = 0 : i64, tpu.core_type = #tpu.core_type<tc>, window_params = [{pipeline_mode = #tpu.pipeline_mode<synchronous>, transform_indices = @transform_0, window_bounds = array<i64: 16, 512>}, {pipeline_mode = #tpu.pipeline_mode<synchronous>, transform_indices = @transform_1, window_bounds = array<i64: 8, 16>}, {pipeline_mode = #tpu.pipeline_mode<synchronous>, transform_indices = @transform_2, window_bounds = array<i64: 3, 8, 24>}, {pipeline_mode = #tpu.pipeline_mode<synchronous>, transform_indices = @transform_3, window_bounds = array<i64: 16, 8>}, {pipeline_mode = #tpu.pipeline_mode<synchronous>, transform_indices = @transform_4, window_bounds = array<i64: 96, 1>}, {pipeline_mode = #tpu.pipeline_mode<synchronous>, transform_indices = @transform_5, window_bounds = array<i64: 9, 512>}, {pipeline_mode = #tpu.pipeline_mode<synchronous>, transform_indices = @transform_6, window_bounds = array<i64: 16, 512>}]} {
    %c0 = arith.constant 0 : index
    %c0_0 = arith.constant 0 : index
    %0 = vector.load %arg1[%c0, %c0_0] : memref<16x512xf32, #tpu.memory_space<vmem>>, vector<16x512xf32>
    %c0_1 = arith.constant 0 : index
    %c0_2 = arith.constant 0 : index
    %1 = vector.load %arg5[%c0_1, %c0_2] : memref<96x1xf32, #tpu.memory_space<vmem>>, vector<16x1xf32>
    %c16 = arith.constant 16 : index
    %c0_3 = arith.constant 0 : index
    %2 = vector.load %arg5[%c16, %c0_3] : memref<96x1xf32, #tpu.memory_space<vmem>>, vector<16x1xf32>
    %c32 = arith.constant 32 : index
    %c0_4 = arith.constant 0 : index
    %3 = vector.load %arg5[%c32, %c0_4] : memref<96x1xf32, #tpu.memory_space<vmem>>, vector<8x1xf32>
    %c48 = arith.constant 48 : index
    %c0_5 = arith.constant 0 : index
    %4 = vector.load %arg5[%c48, %c0_5] : memref<96x1xf32, #tpu.memory_space<vmem>>, vector<8x1xf32>
    %c64 = arith.constant 64 : index
    %c0_6 = arith.constant 0 : index
    %5 = vector.load %arg5[%c64, %c0_6] : memref<96x1xf32, #tpu.memory_space<vmem>>, vector<8x1xf32>
    %c80 = arith.constant 80 : index
    %c0_7 = arith.constant 0 : index
    %6 = vector.load %arg5[%c80, %c0_7] : memref<96x1xf32, #tpu.memory_space<vmem>>, vector<8x1xf32>
    %7 = vector.broadcast %1 : vector<16x1xf32> to vector<16x512xf32>
    %8 = arith.mulf %0, %7 : vector<16x512xf32>
    %9 = vector.broadcast %2 : vector<16x1xf32> to vector<16x512xf32>
    %10 = arith.addf %8, %9 : vector<16x512xf32>
    %cst = arith.constant 0.000000e+00 : f32
    %11 = vector.broadcast %cst : f32 to vector<16x512xf32>
    %12 = arith.maximumf %10, %11 : vector<16x512xf32>
    %c0_8 = arith.constant 0 : index
    %c0_9 = arith.constant 0 : index
    %13 = vector.load %arg2[%c0_8, %c0_9] : memref<8x16xbf16, #tpu.memory_space<vmem>>, vector<8x16xbf16>
    %14 = arith.truncf %12 : vector<16x512xf32> to vector<16x512xbf16>
    %cst_10 = arith.constant dense<0.000000e+00> : vector<8x512xf32>
    %15 = tpu.matmul %13, %14, %cst_10 {dimension_numbers = #tpu.dot_dimension_numbers<[1], [0], [0], [1], [0, 0, 1, 1], [], []>} : vector<8x16xbf16>, vector<16x512xbf16>, vector<8x512xf32> -> vector<8x512xf32>
    %16 = vector.broadcast %3 : vector<8x1xf32> to vector<8x512xf32>
    %17 = arith.mulf %15, %16 : vector<8x512xf32>
    %18 = vector.broadcast %4 : vector<8x1xf32> to vector<8x512xf32>
    %19 = arith.addf %17, %18 : vector<8x512xf32>
    %cst_11 = arith.constant 0.000000e+00 : f32
    %20 = vector.broadcast %cst_11 : f32 to vector<8x512xf32>
    %21 = arith.maximumf %19, %20 : vector<8x512xf32>
    %c17_i32 = arith.constant 17 : i32
    %22 = tpu.dynamic_rotate %21 by %c17_i32 dim 1 : vector<8x512xf32>, i32 -> vector<8x512xf32>
    %c0_12 = arith.constant 0 : index
    %c0_13 = arith.constant 0 : index
    %23 = vector.load %arg6[%c0_12, %c0_13] : memref<9x512xf32, #tpu.memory_space<vmem>>, vector<1x512xf32>
    %24 = vector.broadcast %23 : vector<1x512xf32> to vector<8x512xf32>
    %25 = arith.mulf %22, %24 : vector<8x512xf32>
    %26 = arith.truncf %25 : vector<8x512xf32> to vector<8x512xbf16>
    %c16_i32 = arith.constant 16 : i32
    %27 = tpu.dynamic_rotate %21 by %c16_i32 dim 1 : vector<8x512xf32>, i32 -> vector<8x512xf32>
    %c1 = arith.constant 1 : index
    %c0_14 = arith.constant 0 : index
    %28 = vector.load %arg6[%c1, %c0_14] : memref<9x512xf32, #tpu.memory_space<vmem>>, vector<1x512xf32>
    %29 = vector.broadcast %28 : vector<1x512xf32> to vector<8x512xf32>
    %30 = arith.mulf %27, %29 : vector<8x512xf32>
    %31 = arith.truncf %30 : vector<8x512xf32> to vector<8x512xbf16>
    %c15_i32 = arith.constant 15 : i32
    %32 = tpu.dynamic_rotate %21 by %c15_i32 dim 1 : vector<8x512xf32>, i32 -> vector<8x512xf32>
    %c2 = arith.constant 2 : index
    %c0_15 = arith.constant 0 : index
    %33 = vector.load %arg6[%c2, %c0_15] : memref<9x512xf32, #tpu.memory_space<vmem>>, vector<1x512xf32>
    %34 = vector.broadcast %33 : vector<1x512xf32> to vector<8x512xf32>
    %35 = arith.mulf %32, %34 : vector<8x512xf32>
    %36 = arith.truncf %35 : vector<8x512xf32> to vector<8x512xbf16>
    %37 = tpu.concatenate %26, %31, %36 in 0 : vector<8x512xbf16>, vector<8x512xbf16>, vector<8x512xbf16> -> vector<24x512xbf16>
    %c0_16 = arith.constant 0 : index
    %c0_17 = arith.constant 0 : index
    %c0_18 = arith.constant 0 : index
    %38 = vector.load %arg3[%c0_16, %c0_17, %c0_18] : memref<3x8x24xbf16, #tpu.memory_space<vmem>>, vector<1x8x24xbf16>
    %39 = vector.shape_cast %38 : vector<1x8x24xbf16> to vector<8x24xbf16>
    %cst_19 = arith.constant dense<0.000000e+00> : vector<8x512xf32>
    %40 = tpu.matmul %39, %37, %cst_19 {dimension_numbers = #tpu.dot_dimension_numbers<[1], [0], [0], [1], [0, 0, 1, 1], [], []>} : vector<8x24xbf16>, vector<24x512xbf16>, vector<8x512xf32> -> vector<8x512xf32>
    %c1_i32 = arith.constant 1 : i32
    %41 = tpu.dynamic_rotate %21 by %c1_i32 dim 1 : vector<8x512xf32>, i32 -> vector<8x512xf32>
    %c3 = arith.constant 3 : index
    %c0_20 = arith.constant 0 : index
    %42 = vector.load %arg6[%c3, %c0_20] : memref<9x512xf32, #tpu.memory_space<vmem>>, vector<1x512xf32>
    %43 = vector.broadcast %42 : vector<1x512xf32> to vector<8x512xf32>
    %44 = arith.mulf %41, %43 : vector<8x512xf32>
    %45 = arith.truncf %44 : vector<8x512xf32> to vector<8x512xbf16>
    %46 = arith.truncf %21 : vector<8x512xf32> to vector<8x512xbf16>
    %c511_i32 = arith.constant 511 : i32
    %47 = tpu.dynamic_rotate %21 by %c511_i32 dim 1 : vector<8x512xf32>, i32 -> vector<8x512xf32>
    %c5 = arith.constant 5 : index
    %c0_21 = arith.constant 0 : index
    %48 = vector.load %arg6[%c5, %c0_21] : memref<9x512xf32, #tpu.memory_space<vmem>>, vector<1x512xf32>
    %49 = vector.broadcast %48 : vector<1x512xf32> to vector<8x512xf32>
    %50 = arith.mulf %47, %49 : vector<8x512xf32>
    %51 = arith.truncf %50 : vector<8x512xf32> to vector<8x512xbf16>
    %52 = tpu.concatenate %45, %46, %51 in 0 : vector<8x512xbf16>, vector<8x512xbf16>, vector<8x512xbf16> -> vector<24x512xbf16>
    %c1_22 = arith.constant 1 : index
    %c0_23 = arith.constant 0 : index
    %c0_24 = arith.constant 0 : index
    %53 = vector.load %arg3[%c1_22, %c0_23, %c0_24] : memref<3x8x24xbf16, #tpu.memory_space<vmem>>, vector<1x8x24xbf16>
    %54 = vector.shape_cast %53 : vector<1x8x24xbf16> to vector<8x24xbf16>
    %cst_25 = arith.constant dense<0.000000e+00> : vector<8x512xf32>
    %55 = tpu.matmul %54, %52, %cst_25 {dimension_numbers = #tpu.dot_dimension_numbers<[1], [0], [0], [1], [0, 0, 1, 1], [], []>} : vector<8x24xbf16>, vector<24x512xbf16>, vector<8x512xf32> -> vector<8x512xf32>
    %56 = arith.addf %40, %55 : vector<8x512xf32>
    %c497_i32 = arith.constant 497 : i32
    %57 = tpu.dynamic_rotate %21 by %c497_i32 dim 1 : vector<8x512xf32>, i32 -> vector<8x512xf32>
    %c6 = arith.constant 6 : index
    %c0_26 = arith.constant 0 : index
    %58 = vector.load %arg6[%c6, %c0_26] : memref<9x512xf32, #tpu.memory_space<vmem>>, vector<1x512xf32>
    %59 = vector.broadcast %58 : vector<1x512xf32> to vector<8x512xf32>
    %60 = arith.mulf %57, %59 : vector<8x512xf32>
    %61 = arith.truncf %60 : vector<8x512xf32> to vector<8x512xbf16>
    %c496_i32 = arith.constant 496 : i32
    %62 = tpu.dynamic_rotate %21 by %c496_i32 dim 1 : vector<8x512xf32>, i32 -> vector<8x512xf32>
    %c7 = arith.constant 7 : index
    %c0_27 = arith.constant 0 : index
    %63 = vector.load %arg6[%c7, %c0_27] : memref<9x512xf32, #tpu.memory_space<vmem>>, vector<1x512xf32>
    %64 = vector.broadcast %63 : vector<1x512xf32> to vector<8x512xf32>
    %65 = arith.mulf %62, %64 : vector<8x512xf32>
    %66 = arith.truncf %65 : vector<8x512xf32> to vector<8x512xbf16>
    %c495_i32 = arith.constant 495 : i32
    %67 = tpu.dynamic_rotate %21 by %c495_i32 dim 1 : vector<8x512xf32>, i32 -> vector<8x512xf32>
    %c8 = arith.constant 8 : index
    %c0_28 = arith.constant 0 : index
    %68 = vector.load %arg6[%c8, %c0_28] : memref<9x512xf32, #tpu.memory_space<vmem>>, vector<1x512xf32>
    %69 = vector.broadcast %68 : vector<1x512xf32> to vector<8x512xf32>
    %70 = arith.mulf %67, %69 : vector<8x512xf32>
    %71 = arith.truncf %70 : vector<8x512xf32> to vector<8x512xbf16>
    %72 = tpu.concatenate %61, %66, %71 in 0 : vector<8x512xbf16>, vector<8x512xbf16>, vector<8x512xbf16> -> vector<24x512xbf16>
    %c2_29 = arith.constant 2 : index
    %c0_30 = arith.constant 0 : index
    %c0_31 = arith.constant 0 : index
    %73 = vector.load %arg3[%c2_29, %c0_30, %c0_31] : memref<3x8x24xbf16, #tpu.memory_space<vmem>>, vector<1x8x24xbf16>
    %74 = vector.shape_cast %73 : vector<1x8x24xbf16> to vector<8x24xbf16>
    %cst_32 = arith.constant dense<0.000000e+00> : vector<8x512xf32>
    %75 = tpu.matmul %74, %72, %cst_32 {dimension_numbers = #tpu.dot_dimension_numbers<[1], [0], [0], [1], [0, 0, 1, 1], [], []>} : vector<8x24xbf16>, vector<24x512xbf16>, vector<8x512xf32> -> vector<8x512xf32>
    %76 = arith.addf %56, %75 : vector<8x512xf32>
    %77 = vector.broadcast %5 : vector<8x1xf32> to vector<8x512xf32>
    %78 = arith.mulf %76, %77 : vector<8x512xf32>
    %79 = vector.broadcast %6 : vector<8x1xf32> to vector<8x512xf32>
    %80 = arith.addf %78, %79 : vector<8x512xf32>
    %cst_33 = arith.constant 0.000000e+00 : f32
    %81 = vector.broadcast %cst_33 : f32 to vector<8x512xf32>
    %82 = arith.maximumf %80, %81 : vector<8x512xf32>
    %c0_34 = arith.constant 0 : index
    %c0_35 = arith.constant 0 : index
    %83 = vector.load %arg4[%c0_34, %c0_35] : memref<16x8xbf16, #tpu.memory_space<vmem>>, vector<16x8xbf16>
    %84 = arith.truncf %82 : vector<8x512xf32> to vector<8x512xbf16>
    %cst_36 = arith.constant dense<0.000000e+00> : vector<16x512xf32>
    %85 = tpu.matmul %83, %84, %cst_36 {dimension_numbers = #tpu.dot_dimension_numbers<[1], [0], [0], [1], [0, 0, 1, 1], [], []>} : vector<16x8xbf16>, vector<8x512xbf16>, vector<16x512xf32> -> vector<16x512xf32>
    %86 = arith.addf %85, %0 : vector<16x512xf32>
    %c0_37 = arith.constant 0 : index
    %c0_38 = arith.constant 0 : index
    %87 = vector.load %arg7[%c0_37, %c0_38] : memref<16x512xf32, #tpu.memory_space<vmem>>, vector<16x512xf32>
    tpu.vector_store %arg7[%c0_37, %c0_38], %86 {strides = array<i32>} : memref<16x512xf32, #tpu.memory_space<vmem>>, vector<16x512xf32>,
    return
  }
  func.func @transform_0(%arg0: i32) -> (i32, i32) {
    %c0_i32 = arith.constant 0 : i32
    %c0_i32_0 = arith.constant 0 : i32
    %c0_i32_1 = arith.constant 0 : i32
    return %c0_i32, %c0_i32_0 : i32, i32
  }
  func.func @transform_1(%arg0: i32) -> (i32, i32) {
    %c0_i32 = arith.constant 0 : i32
    %c0_i32_0 = arith.constant 0 : i32
    %c0_i32_1 = arith.constant 0 : i32
    return %c0_i32, %c0_i32_0 : i32, i32
  }
  func.func @transform_2(%arg0: i32) -> (i32, i32, i32) {
    %c0_i32 = arith.constant 0 : i32
    %c0_i32_0 = arith.constant 0 : i32
    %c0_i32_1 = arith.constant 0 : i32
    %c0_i32_2 = arith.constant 0 : i32
    return %c0_i32, %c0_i32_0, %c0_i32_1 : i32, i32, i32
  }
  func.func @transform_3(%arg0: i32) -> (i32, i32) {
    %c0_i32 = arith.constant 0 : i32
    %c0_i32_0 = arith.constant 0 : i32
    %c0_i32_1 = arith.constant 0 : i32
    return %c0_i32, %c0_i32_0 : i32, i32
  }
  func.func @transform_4(%arg0: i32) -> (i32, i32) {
    %c0_i32 = arith.constant 0 : i32
    %c0_i32_0 = arith.constant 0 : i32
    %c0_i32_1 = arith.constant 0 : i32
    return %c0_i32, %c0_i32_0 : i32, i32
  }
  func.func @transform_5(%arg0: i32) -> (i32, i32) {
    %c0_i32 = arith.constant 0 : i32
    %c0_i32_0 = arith.constant 0 : i32
    %c0_i32_1 = arith.constant 0 : i32
    return %c0_i32, %c0_i32_0 : i32, i32
  }
  func.func @transform_6(%arg0: i32) -> (i32, i32) {
    %c0_i32 = arith.constant 0 : i32
    %c0_i32_0 = arith.constant 0 : i32
    %c0_i32_1 = arith.constant 0 : i32
    return %c0_i32, %c0_i32_0 : i32, i32
  }
}

</mosaic_0001>

<bundles_post_ra>
// kernel: tpu_custom_call.1
= control target key start
LH: loop header
LB: loop body
LE: loop exit
PB: predicated region body
PF: predicated region fallthrough
CT: control target
= control target key end

     0   :  { %11 = vsyncpa [#allocation3], 0  ;;  %s1585_s0 = inlined_call_operand.vmem [shape: f32[16,512], index: 0, kind: input, shape index: {}]   ;;  %s1586_s1 = inlined_call_operand.vmem [shape: bf16[8,16], index: 1, kind: input, shape index: {}]   ;;  %s1587_s2 = inlined_call_operand.vmem [shape: bf16[3,8,24], index: 2, kind: input, shape index: {}]   ;;  %s1588_s3 = inlined_call_operand.vmem [shape: bf16[16,8], index: 3, kind: input, shape index: {}]   ;;  %s1589_s4 = inlined_call_operand.vmem [shape: f32[96,1], index: 4, kind: input, shape index: {}]   ;;  %s1590_s5 = inlined_call_operand.hbm [shape: f32[9,512], index: 5, kind: input, shape index: {}]   ;;  %s1591_s6 = inlined_call_operand.hbm [shape: f32[16,512], index: 6, kind: output, shape index: {}]  }
   0x1   :  { %12 = vsyncpa [#allocation4], 0  ;;  %s1204_s21 = smov [#allocation2]   ;;  %s1156_s25 = scalar_lea.hbm %s1590_s5, 1024 }
   0x2   :  { %s28_s22 = sshll.u32 %s1204_s21, 4  ;;  %p1157_p0 = scmp.ne.s32.totalorder %s1590_s5, %s1156_s25  ;;  %s29_s22 = int_to_ptr.vmem [resolvable:$true] %s28_s22 }
   0x3   :  { %p1160_p1 = scmp.lt.u32.totalorder %s1156_s25, %s1590_s5 }
   0x5   :  { %p1162_p2 = pnand %p1160_p1, %p1157_p0 }
   0x7   :  { %1165 = shalt.err (!%p1162_p2)
}
   0x8   :  { %s1166_s30 = scalar_lea.vmem %s29_s22, 1024  ;;  %p1171_p4 = scmp.lt.s32.totalorder %s29_s22, %s29_s22 }
   0x9   :  { %p1167_p3 = scmp.ne.s32.totalorder %s29_s22, %s1166_s30  ;;  %p1172_p5 = scmp.lt.s32.totalorder %s1166_s30, %s1166_s30 }
   0xb   :  { %p1173_p6 = por %p1172_p5, %p1171_p4 }
   0xd   :  { %p1174_p7 = pnand %p1173_p6, %p1167_p3 }
   0xf   :  { %1177 = shalt.err (!%p1174_p7)
}
  0x10   :  { %s1205_s7 = smov 512   ;;  %s1206_s8 = smov 32  }
  0x11   :  { %34 = dma.hbm_to_vmem [thread:$0]  %s1590_s5, 1024, %s29_s22, [#allocation3], %s1205_s7, %s1205_s7, %s1206_s8  }
  0x12   :  { %1200 = dma.done.wait [#allocation3], 1024  }
  0x13   :  { %1201 = vsyncadd [#allocation3], 4294966272  ;;  %v1207_v0 = vmov 0   ;;  %v49_v1 = vld [vmem:[%s1589_s4 + $0x10] sm:$0xff]  ;;  %v47_v2 = vld [vmem:[%s1589_s4] sm:$0xff]  ;;  %vm104_vm0 = vcmask 130048  }
  0x14   :  { %1154 = vset.pattern.permute.xlu1 %v1207_v0  ;;  %1153 = vset.pattern.permute.xlu0 %v1207_v0  ;;  %v50_v3 = vld [vmem:[%s1589_s4 + $0x18] sm:$0xff]  ;;  %v48_v4 = vld [vmem:[%s1589_s4 + $0x8] sm:$0xff]  ;;  %v52_v5 = vld [vmem:[%s1589_s4 + $0x30] sm:$0xff]  ;;  %s1209_s16 = smov 127   ;;  %s1210_s17 = smov 16   ;;  %vm353_vm2 = vcmask 1043456  }
  0x15   :  { %140 = vmatprep.mubr.bf16.mxu0 %v1207_v0  ;;  %181 = vmatprep.mubr.bf16.mxu1 %v1207_v0  ;;  %v51_v6 = vld [vmem:[%s1589_s4 + $0x20] sm:$0xff]  ;;  %v1297_v8 = vld [vmem:[%s1585_s0 + $0x10] sm:$0xff]  ;;  %v1302_v9 = vld [vmem:[%s1585_s0 + $0x8] sm:$0xff]  ;;  %s1211_s18 = smov 17   ;;  %s1212_s19 = smov 15   ;;  %vm489_vm5 = vcmask 195584  }
  0x16   :  { %75 = vperm.xlu1 %1154, %v49_v1   ;;  %57 = vperm.xlu0 %1153, %v47_v2   ;;  %v1292_v7 = vld [vmem:[%s1585_s0] sm:$0xff]  ;;  %v1307_v10 = vld [vmem:[%s1585_s0 + $0x18] sm:$0xff]  ;;  %v1320_v17 = vld [vmem:[%s1585_s0 + $0x30] sm:$0xff]  ;;  %s1213_s20 = smov 112   ;;  %s1214_s21 = smov 113   ;;  %vm976_vm11 = vcmask 64512  }
  0x17   :  { %v1315_v16 = vld [vmem:[%s1585_s0 + $0x20] sm:$0xff]  ;;  %v1325_v18 = vld [vmem:[%s1585_s0 + $0x28] sm:$0xff]  ;;  %v1331_v20 = vld [vmem:[%s1585_s0 + $0x38] sm:$0xff]  ;;  %s1215_s22 = smov 111   ;;  %s1216_s11 = smov [#allocation5]  }
  0x18   :  { %v99_v47 = vld [vmem:[%s1586_s1] sm:$0xf]  ;;  %s1208_s1 = smov 1  }
  0x1a   :  { %80 = vperm.xlu1 %1154, %v50_v3   ;;  %62 = vperm.xlu0 %1153, %v48_v4  }
  0x1e   :  { %201 = vperm.xlu1 %1154, %v52_v5   ;;  %192 = vperm.xlu0 %1153, %v51_v6  }
  0x95   :  { %v76_v11 = vpop.permute.xlu1 %75  ;;  %v58_v12 = vpop.permute.xlu0 %57 }
  0x96   :  { %v65_v13 = vmul.f32 %v58_v12, %v1292_v7  ;;  %v67_v14 = vmul.f32 %v58_v12, %v1297_v8  ;;  %v66_v15 = vmul.f32 %v58_v12, %v1302_v9  ;;  %v68_v19 = vmul.f32 %v58_v12, %v1307_v10  ;;  %v54_v12 = vld [vmem:[%s1589_s4 + $0x50] sm:$0xff] }
  0x98   :  { %v84_v22 = vadd.f32 %v76_v11, %v66_v15  ;;  %v83_v23 = vadd.f32 %v76_v11, %v65_v13  ;;  %v85_v27 = vadd.f32 %v76_v11, %v67_v14  ;;  %v86_v30 = vadd.f32 %v76_v11, %v68_v19  ;;  %v53_v11 = vld [vmem:[%s1589_s4 + $0x40] sm:$0xff] }
  0x99   :  { %v63_v21 = vpop.permute.xlu0 %62  ;;  %v81_v28 = vpop.permute.xlu1 %80  ;;  %v220_v13 = vlaneseq }
  0x9a   :  { %v69_v24 = vmul.f32 %v63_v21, %v1315_v16  ;;  %v71_v25 = vmul.f32 %v63_v21, %v1320_v17  ;;  %v70_v26 = vmul.f32 %v63_v21, %v1325_v18  ;;  %v72_v29 = vmul.f32 %v63_v21, %v1331_v20  ;;  %v385_v21 = vld [vmem:[#allocation2 + $0x3] ss:$8 sm:$0xf] }
  0x9b   :  { %v92_v34 = vmax.f32 %v84_v22, 0.0  ;;  %v91_v36 = vmax.f32 %v83_v23, 0.0  ;;  %v93_v39 = vmax.f32 %v85_v27, 0.0  ;;  %v94_v41 = vmax.f32 %v86_v30, 0.0 }
  0x9c   :  { %v88_v31 = vadd.f32 %v81_v28, %v70_v26  ;;  %v87_v32 = vadd.f32 %v81_v28, %v69_v24  ;;  %v89_v33 = vadd.f32 %v81_v28, %v71_v25  ;;  %v90_v35 = vadd.f32 %v81_v28, %v72_v29 }
  0x9d   :  { %v202_v48 = vpop.permute.xlu1 %201  ;;  %v193_v49 = vpop.permute.xlu0 %192  ;;  %v230_v14 = vshrl.u32 %v220_v13, 7  ;;  %v1388_v15 = vand.u32 127, %v220_v13 }
  0x9e   :  { %v96_v37 = vmax.f32 %v88_v31, 0.0  ;;  %v95_v38 = vmax.f32 %v87_v32, 0.0  ;;  %v97_v40 = vmax.f32 %v89_v33, 0.0  ;;  %v98_v42 = vmax.f32 %v90_v35, 0.0 }
  0x9f   :  { %v1390_v19 = vsub.s32 1, %v230_v14  ;;  %v1392_v22 = vsub.s32 2, %v230_v14  ;;  %vm379_vm1 = vcmp.lt.s32.totalorder %v1388_v15, 1  ;;  %v1396_v24 = vsub.s32 0, %v230_v14 }
  0xa0   :  { %v101_v43 = vpack.c.bf16 %v96_v37, %v92_v34  ;;  %v100_v44 = vpack.c.bf16 %v95_v38, %v91_v36  ;;  %v102_v45 = vpack.c.bf16 %v97_v40, %v93_v39  ;;  %v103_v46 = vpack.c.bf16 %v98_v42, %v94_v41  ;;  %v433_v35 = vld [vmem:[#allocation2 + $0x5] ss:$8 sm:$0xf] }
  0xa1   :  { %v394_v23 = vrot.slane %v385_v21, %v1390_v19  ;;  %v1398_v25 = vsub.s32 3, %v230_v14  ;;  %v398_v30 = vrot.slane %v385_v21, %v1392_v22  ;;  %v390_v32 = vrot.slane %v385_v21, %v1396_v24 }
  0xa2   :  { %108 = vmatprep.subr.bf16.mxu0 %v101_v43  ;;  %149 = vmatprep.subr.bf16.mxu1 %v103_v46  ;;  %vm427_vm3 = vcmp.lt.s32.totalorder %v1388_v15, 127  ;;  %vm265_vm4 = vcmp.lt.s32.totalorder %v1388_v15, 16  ;;  %vm222_vm6 = vcmp.lt.s32.totalorder %v1388_v15, 17  ;;  %vm309_vm7 = vcmp.lt.s32.totalorder %v1388_v15, 15 }
  0xa3   :  { %109 = vmatpush1.bf16.msra.mxu0 %v100_v44  ;;  %150 = vmatpush1.bf16.msra.mxu1 %v102_v45  ;;  %v402_v33 = vrot.slane %v385_v21, %v1398_v25  ;;  %vm736_vm8 = vcmp.lt.s32.totalorder %v1388_v15, 112  ;;  %vm692_vm9 = vcmp.lt.s32.totalorder %v1388_v15, 113  ;;  %vm780_vm10 = vcmp.lt.s32.totalorder %v1388_v15, 111 }
  0xa6   :  { %1103 = vmatmul.mubr.msk.bf16.vlgmr.msra.gmra.mrb[0].mxu0 %vm104_vm0, %v99_v47  ;;  %1104 = vmatmul.mubr.msk.bf16.vlgmr.msra.gmra.mrb[0].mxu1 %vm104_vm0, %v99_v47 }
  0xa7   :  { %537 = vmatprep.mubr.bf16.mxu0 %v1207_v0  ;;  %578 = vmatprep.mubr.bf16.mxu1 %v1207_v0 }
 0x179   :  { %v142_v50 = vpop.f32.mrb[0].mxu0  ;;  %v183_v52 = vpop.f32.mrb[0].mxu1 }
 0x17a   :  { %v195_v51 = vmul.f32 %v193_v49, %v142_v50  ;;  %v144_v53 = vpop.f32.mrb[1].mxu0  ;;  %v197_v54 = vmul.f32 %v193_v49, %v183_v52  ;;  %v185_v56 = vpop.f32.mrb[1].mxu1 }
 0x17b   :  { %v196_v55 = vmul.f32 %v193_v49, %v144_v53  ;;  %v146_v57 = vpop.f32.mrb[2].mxu0  ;;  %v198_v59 = vmul.f32 %v193_v49, %v185_v56  ;;  %v187_v61 = vpop.f32.mrb[2].mxu1  ;;  %v438_v49 = vrot.slane %v433_v35, %v1396_v24 }
 0x17c   :  { %v204_v58 = vadd.f32 %v202_v48, %v195_v51  ;;  %v147_v60 = vpop.f32.mrb[3].mxu0  ;;  %v188_v63 = vpop.f32.mrb[3].mxu1  ;;  %v206_v2 = vadd.f32 %v202_v48, %v197_v54 }
 0x17d   :  { %v205_v62 = vadd.f32 %v202_v48, %v196_v55  ;;  %v207_v4 = vadd.f32 %v202_v48, %v198_v59  ;;  %v446_v60 = vrot.slane %v433_v35, %v1392_v22 }
 0x17e   :  { %v1342_v1 = vmax.f32 %v204_v58, 0.0  ;;  %v1348_v5 = vmax.f32 %v206_v2, 0.0  ;;  %v442_v58 = vrot.slane %v433_v35, %v1390_v19 }
 0x17f   :  { %v1344_v3 = vmax.f32 %v205_v62, 0.0  ;;  %v1350_v6 = vmax.f32 %v207_v4, 0.0 }
 0x180   :  { %371 = vrot.lane.b32.xlu0 %v1342_v1, %s1208_s1  ;;  %v415_v36 = vpack.c.bf16 %v1342_v1, %v1342_v1  ;;  %v417_v45 = vpack.c.bf16 %v1348_v5, %v1348_v5 }
 0x181   :  { %373 = vrot.lane.b32.xlu1 %v1344_v3, %s1208_s1  ;;  %v416_v28 = vpack.c.bf16 %v1344_v3, %v1344_v3  ;;  %v418_v41 = vpack.c.bf16 %v1350_v6, %v1350_v6 }
 0x182   :  { %v467_v55 = vrot.slane %v415_v36, 4  ;;  %v469_v59 = vrot.slane %v417_v45, 4 }
 0x183   :  { %v468_v40 = vrot.slane %v416_v28, 4  ;;  %v470_v56 = vrot.slane %v418_v41, 4 }
 0x184   :  { %375 = vrot.lane.b32.xlu0 %v1348_v5, %s1208_s1 }
 0x185   :  { %377 = vrot.lane.b32.xlu1 %v1350_v6, %s1208_s1 }
 0x188   :  { %419 = vrot.lane.b32.xlu0 %v1342_v1, %s1209_s16 }
 0x189   :  { %421 = vrot.lane.b32.xlu1 %v1344_v3, %s1209_s16 }
 0x18c   :  { %423 = vrot.lane.b32.xlu0 %v1348_v5, %s1209_s16 }
 0x18d   :  { %425 = vrot.lane.b32.xlu1 %v1350_v6, %s1209_s16 }
 0x190   :  { %257 = vrot.lane.b32.xlu0 %v1342_v1, %s1210_s17 }
 0x191   :  { %259 = vrot.lane.b32.xlu1 %v1344_v3, %s1210_s17 }
 0x194   :  { %261 = vrot.lane.b32.xlu0 %v1348_v5, %s1210_s17 }
 0x195   :  { %263 = vrot.lane.b32.xlu1 %v1350_v6, %s1210_s17 }
 0x198   :  { %212 = vrot.lane.b32.xlu0 %v1342_v1, %s1211_s18 }
 0x199   :  { %214 = vrot.lane.b32.xlu1 %v1344_v3, %s1211_s18 }
 0x19c   :  { %216 = vrot.lane.b32.xlu0 %v1348_v5, %s1211_s18 }
 0x19d   :  { %218 = vrot.lane.b32.xlu1 %v1350_v6, %s1211_s18 }
 0x1a0   :  { %301 = vrot.lane.b32.xlu0 %v1342_v1, %s1212_s19 }
 0x1a1   :  { %303 = vrot.lane.b32.xlu1 %v1344_v3, %s1212_s19 }
 0x1a4   :  { %305 = vrot.lane.b32.xlu0 %v1348_v5, %s1212_s19 }
 0x1a5   :  { %307 = vrot.lane.b32.xlu1 %v1350_v6, %s1212_s19 }
 0x1a8   :  { %728 = vrot.lane.b32.xlu0 %v1342_v1, %s1213_s20 }
 0x1a9   :  { %730 = vrot.lane.b32.xlu1 %v1344_v3, %s1213_s20 }
 0x1ac   :  { %732 = vrot.lane.b32.xlu0 %v1348_v5, %s1213_s20 }
 0x1ad   :  { %734 = vrot.lane.b32.xlu1 %v1350_v6, %s1213_s20 }
 0x1b0   :  { %684 = vrot.lane.b32.xlu0 %v1342_v1, %s1214_s21 }
 0x1b1   :  { %686 = vrot.lane.b32.xlu1 %v1344_v3, %s1214_s21 }
 0x1b4   :  { %688 = vrot.lane.b32.xlu0 %v1348_v5, %s1214_s21 }
 0x1b5   :  { %690 = vrot.lane.b32.xlu1 %v1350_v6, %s1214_s21 }
 0x1b8   :  { %772 = vrot.lane.b32.xlu0 %v1342_v1, %s1215_s22  ;;  %v450_v1 = vrot.slane %v433_v35, %v1398_v25  ;;  %v1105_v35 = vld [vmem:[%s1587_s2 + $0x4] sm:$0xf] }
 0x1b9   :  { %774 = vrot.lane.b32.xlu1 %v1344_v3, %s1215_s22 }
 0x1bc   :  { %776 = vrot.lane.b32.xlu0 %v1348_v5, %s1215_s22 }
 0x1bd   :  { %778 = vrot.lane.b32.xlu1 %v1350_v6, %s1215_s22  ;;  %v271_v6 = vld [vmem:[#allocation2 + $0x1] ss:$8 sm:$0xf] }
 0x1be   :  { %v280_v28 = vrot.slane %v271_v6, %v1390_v19 }
 0x1c0   :  { %945 = vperm.xlu0 %1153, %v53_v11  }
 0x1c1   :  { %954 = vperm.xlu1 %1154, %v54_v12  }
 0x1f2   :  { %v372_v26 = vpop.permute.xlu0 %371 }
 0x1f3   :  { %v374_v27 = vpop.permute.xlu1 %373 }
 0x1f4   :  { %v382_v29 = vsel %vm379_vm1, %v372_v26, %v374_v27 }
 0x1f5   :  { %v408_v31 = vmul.f32 %v394_v23, %v382_v29 }
 0x1f6   :  { %v376_v34 = vpop.permute.xlu0 %375 }
 0x1f7   :  { %v412_v37 = vpack.c.bf16 %v408_v31, %v408_v31  ;;  %v381_v38 = vsel %vm379_vm1, %v374_v27, %v376_v34  ;;  %v378_v39 = vpop.permute.xlu1 %377 }
 0x1f8   :  { %v409_v42 = vmul.f32 %v398_v30, %v381_v38  ;;  %v380_v43 = vsel %vm379_vm1, %v376_v34, %v378_v39  ;;  %v383_v44 = vsel %vm379_vm1, %v378_v39, %v372_v26  ;;  %v227_v38 = vld [vmem:[#allocation2] ss:$8 sm:$0xf]  ;;  %v276_v39 = vrot.slane %v271_v6, %v1396_v24 }
 0x1f9   :  { %v407_v46 = vmul.f32 %v390_v32, %v383_v44  ;;  %v410_v47 = vmul.f32 %v402_v33, %v380_v43  ;;  %v477_v48 = vsel %vm353_vm2, %v412_v37, %v468_v40  ;;  %v288_v40 = vrot.slane %v271_v6, %v1398_v25 }
 0x1fa   :  { %v413_v50 = vpack.c.bf16 %v409_v42, %v409_v42  ;;  %v420_v51 = vpop.permute.xlu0 %419  ;;  %505 = vmatprep.subr.bf16.mxu0 %v477_v48  ;;  %v284_v42 = vrot.slane %v271_v6, %v1392_v22 }
 0x1fb   :  { %v411_v52 = vpack.c.bf16 %v407_v46, %v407_v46  ;;  %v414_v53 = vpack.c.bf16 %v410_v47, %v410_v47  ;;  %v422_v54 = vpop.permute.xlu1 %421  ;;  %v236_v46 = vrot.slane %v227_v38, %v1390_v19 }
 0x1fc   :  { %v430_v57 = vsel %vm427_vm3, %v420_v51, %v422_v54  ;;  %v481_v3 = vsel %vm353_vm2, %v413_v50, %v469_v59 }
 0x1fd   :  { %v455_v61 = vmul.f32 %v438_v49, %v430_v57  ;;  %v473_v62 = vsel %vm353_vm2, %v411_v52, %v467_v55  ;;  %v485_v63 = vsel %vm353_vm2, %v414_v53, %v470_v56  ;;  %v232_v56 = vrot.slane %v227_v38, %v1396_v24 }
 0x1fe   :  { %v424_v2 = vpop.permute.xlu0 %423  ;;  %506 = vmatpush1.bf16.msra.mxu0 %v473_v62  ;;  %546 = vmatprep.subr.bf16.mxu1 %v485_v63  ;;  %v244_v57 = vrot.slane %v227_v38, %v1398_v25 }
 0x1ff   :  { %v429_v4 = vsel %vm427_vm3, %v422_v54, %v424_v2  ;;  %547 = vmatpush1.bf16.msra.mxu1 %v481_v3  ;;  %v426_v5 = vpop.permute.xlu1 %425  ;;  %v459_v11 = vpack.c.bf16 %v455_v61, %v455_v61  ;;  %v240_v54 = vrot.slane %v227_v38, %v1392_v22 }
 0x200   :  { %v456_v12 = vmul.f32 %v442_v58, %v429_v4  ;;  %v428_v13 = vsel %vm427_vm3, %v424_v2, %v426_v5  ;;  %v431_v14 = vsel %vm427_vm3, %v426_v5, %v420_v51 }
 0x201   :  { %v457_v21 = vmul.f32 %v446_v60, %v428_v13  ;;  %v458_v23 = vmul.f32 %v450_v1, %v431_v14  ;;  %v494_v33 = vsel %vm353_vm2, %v459_v11, 0  ;;  %v315_v60 = vld [vmem:[#allocation2 + $0x2] ss:$8 sm:$0xf] }
 0x202   :  { %v460_v26 = vpack.c.bf16 %v456_v12, %v456_v12  ;;  %v258_v27 = vpop.permute.xlu0 %257  ;;  %v324_v14 = vrot.slane %v315_v60, %v1390_v19  ;;  %v332_v38 = vrot.slane %v315_v60, %v1398_v25 }
 0x203   :  { %v461_v29 = vpack.c.bf16 %v457_v21, %v457_v21  ;;  %v462_v30 = vpack.c.bf16 %v458_v23, %v458_v23  ;;  %v260_v31 = vpop.permute.xlu1 %259 }
 0x204   :  { %v268_v32 = vsel %vm265_vm4, %v258_v27, %v260_v31  ;;  %1106 = vmatprep.subr.msk.bf16.mxu0 %vm353_vm2, %v460_v26 }
 0x205   :  { %508 = vmatpush1.bf16.msra.mxu0 %v494_v33  ;;  %1108 = vmatprep.subr.msk.bf16.mxu1 %vm353_vm2, %v462_v30  ;;  %v500_v34 = vsel %vm353_vm2, %v461_v29, 0  ;;  %v294_v36 = vmul.f32 %v280_v28, %v268_v32  ;;  %v328_v33 = vrot.slane %v315_v60, %v1392_v22 }
 0x206   :  { %v262_v37 = vpop.permute.xlu0 %261  ;;  %549 = vmatpush1.bf16.msra.mxu1 %v500_v34  ;;  %v320_v34 = vrot.slane %v315_v60, %v1396_v24  ;;  %v698_v60 = vld [vmem:[#allocation2 + $0x6] ss:$8 sm:$0xf] }
 0x207   :  { %v264_v41 = vpop.permute.xlu1 %263  ;;  %v267_v45 = vsel %vm265_vm4, %v260_v31, %v262_v37  ;;  %v298_v47 = vpack.c.bf16 %v294_v36, %v294_v36 }
 0x208   :  { %v266_v43 = vsel %vm265_vm4, %v262_v37, %v264_v41  ;;  %v269_v44 = vsel %vm265_vm4, %v264_v41, %v258_v27  ;;  %1107 = vmatmul.mubr.msk.bf16.vlgmr.msra.gmra.mrb[4].mxu0 %vm489_vm5, %v1105_v35  ;;  %v295_v52 = vmul.f32 %v284_v42, %v267_v45 }
 0x209   :  { %1109 = vmatmul.mubr.msk.bf16.vlgmr.msra.gmra.mrb[4].mxu1 %vm489_vm5, %v1105_v35  ;;  %634 = vmatprep.mubr.bf16.mxu0 %v1207_v0  ;;  %v293_v49 = vmul.f32 %v276_v39, %v269_v44  ;;  %v296_v50 = vmul.f32 %v288_v40, %v266_v43  ;;  %v350_v58 = vrot.slane %v298_v47, 4 }
 0x20a   :  { %v213_v48 = vpop.permute.xlu0 %212  ;;  %675 = vmatprep.mubr.bf16.mxu1 %v1207_v0  ;;  %v299_v3 = vpack.c.bf16 %v295_v52, %v295_v52 }
 0x20b   :  { %v215_v51 = vpop.permute.xlu1 %214  ;;  %v297_v61 = vpack.c.bf16 %v293_v49, %v293_v49  ;;  %v300_v62 = vpack.c.bf16 %v296_v50, %v296_v50 }
 0x20c   :  { %v225_v53 = vsel %vm222_vm6, %v213_v48, %v215_v51  ;;  %v351_v31 = vrot.slane %v299_v3, 4 }
 0x20d   :  { %v250_v55 = vmul.f32 %v236_v46, %v225_v53  ;;  %v349_v26 = vrot.slane %v297_v61, 4  ;;  %v352_v27 = vrot.slane %v300_v62, 4  ;;  %v742_v53 = vld [vmem:[#allocation2 + $0x7] ss:$8 sm:$0xf] }
 0x20e   :  { %v217_v59 = vpop.permute.xlu0 %216  ;;  %v370_v61 = vld [vmem:[%s1587_s2] sm:$0xf] }
 0x20f   :  { %v254_v63 = vpack.c.bf16 %v250_v55, %v250_v55  ;;  %v224_v1 = vsel %vm222_vm6, %v215_v51, %v217_v59  ;;  %v219_v2 = vpop.permute.xlu1 %218 }
 0x210   :  { %v251_v4 = vmul.f32 %v240_v54, %v224_v1  ;;  %v223_v5 = vsel %vm222_vm6, %v217_v59, %v219_v2  ;;  %v226_v6 = vsel %vm222_vm6, %v219_v2, %v213_v48  ;;  %v755_v1 = vrot.slane %v742_v53, %v1392_v22 }
 0x211   :  { %v249_v11 = vmul.f32 %v232_v56, %v226_v6  ;;  %v252_v12 = vmul.f32 %v244_v57, %v223_v5  ;;  %v360_v13 = vsel %vm353_vm2, %v254_v63, %v350_v58  ;;  %v747_v57 = vrot.slane %v742_v53, %v1396_v24 }
 0x212   :  { %v255_v21 = vpack.c.bf16 %v251_v4, %v251_v4  ;;  %v302_v23 = vpop.permute.xlu0 %301  ;;  %602 = vmatprep.subr.bf16.mxu0 %v360_v13  ;;  %v751_v58 = vrot.slane %v742_v53, %v1390_v19  ;;  %v759_v2 = vrot.slane %v742_v53, %v1398_v25  ;;  %v703_v6 = vrot.slane %v698_v60, %v1396_v24 }
 0x213   :  { %v253_v28 = vpack.c.bf16 %v249_v11, %v249_v11  ;;  %v256_v29 = vpack.c.bf16 %v252_v12, %v252_v12  ;;  %v304_v30 = vpop.permute.xlu1 %303 }
 0x214   :  { %v312_v32 = vsel %vm309_vm7, %v302_v23, %v304_v30  ;;  %v364_v40 = vsel %vm353_vm2, %v255_v21, %v351_v31 }
 0x215   :  { %v338_v35 = vmul.f32 %v324_v14, %v312_v32  ;;  %v356_v36 = vsel %vm353_vm2, %v253_v28, %v349_v26  ;;  %v368_v37 = vsel %vm353_vm2, %v256_v29, %v352_v27  ;;  %v707_v27 = vrot.slane %v698_v60, %v1390_v19 }
 0x216   :  { %v306_v39 = vpop.permute.xlu0 %305  ;;  %603 = vmatpush1.bf16.msra.mxu0 %v356_v36  ;;  %643 = vmatprep.subr.bf16.mxu1 %v368_v37  ;;  %v711_v29 = vrot.slane %v698_v60, %v1392_v22 }
 0x217   :  { %v342_v41 = vpack.c.bf16 %v338_v35, %v338_v35  ;;  %v311_v42 = vsel %vm309_vm7, %v304_v30, %v306_v39  ;;  %644 = vmatpush1.bf16.msra.mxu1 %v364_v40  ;;  %v308_v43 = vpop.permute.xlu1 %307  ;;  %v715_v30 = vrot.slane %v698_v60, %v1398_v25 }
 0x218   :  { %v339_v44 = vmul.f32 %v328_v33, %v311_v42  ;;  %v310_v45 = vsel %vm309_vm7, %v306_v39, %v308_v43  ;;  %v313_v46 = vsel %vm309_vm7, %v308_v43, %v302_v23 }
 0x219   :  { %v337_v47 = vmul.f32 %v320_v34, %v313_v46  ;;  %v340_v48 = vmul.f32 %v332_v38, %v310_v45  ;;  %1110 = vmatprep.subr.msk.bf16.mxu0 %vm353_vm2, %v342_v41  ;;  %v786_v34 = vld [vmem:[#allocation2 + $0x20] ss:$8 sm:$0xf] }
 0x21a   :  { %v343_v49 = vpack.c.bf16 %v339_v44, %v339_v44  ;;  %v729_v50 = vpop.permute.xlu0 %728  ;;  %v791_v45 = vrot.slane %v786_v34, %v1396_v24  ;;  %v803_v24 = vrot.slane %v786_v34, %v1398_v25 }
 0x21b   :  { %v341_v51 = vpack.c.bf16 %v337_v47, %v337_v47  ;;  %v344_v52 = vpack.c.bf16 %v340_v48, %v340_v48  ;;  %v731_v54 = vpop.permute.xlu1 %730 }
 0x21c   :  { %v597_v55 = vsel %vm353_vm2, %v343_v49, 0  ;;  %v739_v62 = vsel %vm736_vm8, %v729_v50, %v731_v54 }
 0x21d   :  { %1112 = vmatprep.subr.msk.bf16.mxu1 %vm353_vm2, %v344_v52  ;;  %v591_v56 = vsel %vm353_vm2, %v341_v51, 0  ;;  %v764_v11 = vmul.f32 %v747_v57, %v739_v62 }
 0x21e   :  { %v733_v59 = vpop.permute.xlu0 %732  ;;  %605 = vmatpush1.bf16.msra.mxu0 %v591_v56  ;;  %646 = vmatpush1.bf16.msra.mxu1 %v597_v55 }
 0x21f   :  { %v738_v63 = vsel %vm736_vm8, %v731_v54, %v733_v59  ;;  %v735_v3 = vpop.permute.xlu1 %734  ;;  %v768_v31 = vpack.c.bf16 %v764_v11, %v764_v11 }
 0x220   :  { %v737_v4 = vsel %vm736_vm8, %v733_v59, %v735_v3  ;;  %v740_v5 = vsel %vm736_vm8, %v735_v3, %v729_v50  ;;  %v765_v12 = vmul.f32 %v751_v58, %v738_v63  ;;  %v795_v50 = vrot.slane %v786_v34, %v1390_v19 }
 0x221   :  { %1111 = vmatmul.mubr.msk.bf16.vlgmr.msra.gmra.mrb[4].mxu0 %vm489_vm5, %v370_v61  ;;  %1113 = vmatmul.mubr.msk.bf16.vlgmr.msra.gmra.mrb[4].mxu1 %vm489_vm5, %v370_v61  ;;  %v766_v14 = vmul.f32 %v755_v1, %v737_v4  ;;  %v767_v21 = vmul.f32 %v759_v2, %v740_v5  ;;  %v820_v46 = vrot.slane %v768_v31, 4  ;;  %v799_v58 = vrot.slane %v786_v34, %v1392_v22 }
 0x222   :  { %v685_v13 = vpop.permute.xlu0 %684  ;;  %889 = vmatprep.mubr.bf16.mxu0 %v1207_v0  ;;  %930 = vmatprep.mubr.bf16.mxu1 %v1207_v0  ;;  %v769_v32 = vpack.c.bf16 %v765_v12, %v765_v12 }
 0x223   :  { %v687_v23 = vpop.permute.xlu1 %686  ;;  %v770_v35 = vpack.c.bf16 %v766_v14, %v766_v14  ;;  %v771_v36 = vpack.c.bf16 %v767_v21, %v767_v21  ;;  %v1114_v21 = vld [vmem:[%s1587_s2 + $0x8] sm:$0xf] }
 0x224   :  { %v695_v26 = vsel %vm692_vm9, %v685_v13, %v687_v23  ;;  %v821_v47 = vrot.slane %v769_v32, 4 }
 0x225   :  { %v720_v28 = vmul.f32 %v703_v6, %v695_v26  ;;  %v822_v51 = vrot.slane %v770_v35, 4  ;;  %v823_v52 = vrot.slane %v771_v36, 4 }
 0x226   :  { %v689_v33 = vpop.permute.xlu0 %688 }
 0x227   :  { %v694_v37 = vsel %vm692_vm9, %v687_v23, %v689_v33  ;;  %v691_v38 = vpop.permute.xlu1 %690  ;;  %v724_v42 = vpack.c.bf16 %v720_v28, %v720_v28 }
 0x228   :  { %v721_v39 = vmul.f32 %v707_v27, %v694_v37  ;;  %v693_v40 = vsel %vm692_vm9, %v689_v33, %v691_v38  ;;  %v696_v41 = vsel %vm692_vm9, %v691_v38, %v685_v13 }
 0x229   :  { %v722_v43 = vmul.f32 %v711_v29, %v693_v40  ;;  %v723_v44 = vmul.f32 %v715_v30, %v696_v41  ;;  %v826_v60 = vsel %vm353_vm2, %v724_v42, %v820_v46 }
 0x22a   :  { %v725_v48 = vpack.c.bf16 %v721_v39, %v721_v39  ;;  %v773_v49 = vpop.permute.xlu0 %772 }
 0x22b   :  { %v726_v53 = vpack.c.bf16 %v722_v43, %v722_v43  ;;  %v727_v54 = vpack.c.bf16 %v723_v44, %v723_v44  ;;  %v775_v55 = vpop.permute.xlu1 %774 }
 0x22c   :  { %v783_v56 = vsel %vm780_vm10, %v773_v49, %v775_v55  ;;  %v830_v57 = vsel %vm353_vm2, %v725_v48, %v821_v47 }
 0x22d   :  { %v808_v59 = vmul.f32 %v791_v45, %v783_v56  ;;  %857 = vmatprep.subr.bf16.mxu0 %v830_v57  ;;  %v838_v19 = vsel %vm353_vm2, %v727_v54, %v823_v52  ;;  %v834_v61 = vsel %vm353_vm2, %v726_v53, %v822_v51  ;;  %v1155_v51 = vld [vmem:[%s1588_s3] sm:$0xff]   ;;  %s1091_s3 = sshll.u32 %s1216_s11, 4  ;;  %s1092_s3 = int_to_ptr.vmem [resolvable:$true] %s1091_s3 }
 0x22e   :  { %v777_v62 = vpop.permute.xlu0 %776  ;;  %858 = vmatpush1.bf16.msra.mxu0 %v826_v60  ;;  %898 = vmatprep.subr.bf16.mxu1 %v838_v19  ;;  %s1178_s12 = scalar_lea.vmem %s1092_s3, 1024  ;;  %p1183_p9 = scmp.lt.s32.totalorder %s1092_s3, %s1092_s3 }
 0x22f   :  { %v782_v63 = vsel %vm780_vm10, %v775_v55, %v777_v62  ;;  %899 = vmatpush1.bf16.msra.mxu1 %v834_v61  ;;  %v779_v1 = vpop.permute.xlu1 %778  ;;  %v812_v2 = vpack.c.bf16 %v808_v59, %v808_v59  ;;  %p1179_p8 = scmp.ne.s32.totalorder %s1092_s3, %s1178_s12  ;;  %p1184_p10 = scmp.lt.s32.totalorder %s1178_s12, %s1178_s12 }
 0x230   :  { %v809_v22 = vmul.f32 %v795_v50, %v782_v63  ;;  %v781_v25 = vsel %vm780_vm10, %v777_v62, %v779_v1  ;;  %v784_v3 = vsel %vm780_vm10, %v779_v1, %v773_v49 }
 0x231   :  { %v810_v4 = vmul.f32 %v799_v58, %v781_v25  ;;  %v811_v5 = vmul.f32 %v803_v24, %v784_v3  ;;  %v846_v13 = vsel %vm353_vm2, %v812_v2, 0  ;;  %p1185_p11 = por %p1184_p10, %p1183_p9 }
 0x232   :  { %v813_v6 = vpack.c.bf16 %v809_v22, %v809_v22 }
 0x233   :  { %v814_v11 = vpack.c.bf16 %v810_v4, %v810_v4  ;;  %v815_v12 = vpack.c.bf16 %v811_v5, %v811_v5  ;;  %p1186_p12 = pnand %p1185_p11, %p1179_p8 }
 0x234   :  { %1115 = vmatprep.subr.msk.bf16.mxu0 %vm353_vm2, %v813_v6 }
 0x235   :  { %860 = vmatpush1.bf16.msra.mxu0 %v846_v13  ;;  %1117 = vmatprep.subr.msk.bf16.mxu1 %vm353_vm2, %v815_v12  ;;  %v852_v14 = vsel %vm353_vm2, %v814_v11, 0 }
 0x236   :  { %901 = vmatpush1.bf16.msra.mxu1 %v852_v14 }
 0x238   :  { %1116 = vmatmul.mubr.msk.bf16.vlgmr.msra.gmra.mrb[4].mxu0 %vm489_vm5, %v1114_v21 }
 0x239   :  { %1118 = vmatmul.mubr.msk.bf16.vlgmr.msra.gmra.mrb[4].mxu1 %vm489_vm5, %v1114_v21  ;;  %1024 = vmatprep.mubr.bf16.mxu0 %v1207_v0 }
 0x23a   :  { %1067 = vmatprep.mubr.bf16.mxu1 %v1207_v0 }
 0x23f   :  { %v946_v15 = vpop.permute.xlu0 %945 }
 0x240   :  { %v955_v23 = vpop.permute.xlu1 %954 }
 0x30b   :  { %v891_v26 = vpop.f32.mrb[4].mxu0 }
 0x30c   :  { %v948_v27 = vmul.f32 %v946_v15, %v891_v26  ;;  %v893_v28 = vpop.f32.mrb[5].mxu0  ;;  %v932_v29 = vpop.f32.mrb[4].mxu1 }
 0x30d   :  { %v949_v30 = vmul.f32 %v946_v15, %v893_v28  ;;  %v950_v31 = vmul.f32 %v946_v15, %v932_v29  ;;  %v895_v32 = vpop.f32.mrb[6].mxu0  ;;  %v934_v33 = vpop.f32.mrb[5].mxu1 }
 0x30e   :  { %v957_v34 = vadd.f32 %v955_v23, %v948_v27  ;;  %v951_v35 = vmul.f32 %v946_v15, %v934_v33  ;;  %v896_v36 = vpop.f32.mrb[7].mxu0  ;;  %v936_v37 = vpop.f32.mrb[6].mxu1 }
 0x30f   :  { %v958_v38 = vadd.f32 %v955_v23, %v949_v30  ;;  %v959_v39 = vadd.f32 %v955_v23, %v950_v31  ;;  %v937_v40 = vpop.f32.mrb[7].mxu1 }
 0x310   :  { %v961_v41 = vmax.f32 %v957_v34, 0.0  ;;  %v960_v42 = vadd.f32 %v955_v23, %v951_v35 }
 0x311   :  { %v962_v0 = vmax.f32 %v958_v38, 0.0  ;;  %v963_v43 = vmax.f32 %v959_v39, 0.0 }
 0x312   :  { %v967_v44 = vpack.c.bf16 %v961_v41, %v961_v41  ;;  %v964_v45 = vmax.f32 %v960_v42, 0.0 }
 0x313   :  { %v968_v46 = vpack.c.bf16 %v962_v0, %v962_v0  ;;  %v969_v47 = vpack.c.bf16 %v963_v43, %v963_v43 }
 0x314   :  { %v970_v48 = vpack.c.bf16 %v964_v45, %v964_v45  ;;  %v981_v49 = vsel %vm353_vm2, %v967_v44, 0 }
 0x315   :  { %1120 = vmatprep.subr.msk.bf16.mxu0 %vm353_vm2, %v968_v46  ;;  %v987_v50 = vsel %vm353_vm2, %v969_v47, 0 }
 0x316   :  { %993 = vmatpush1.bf16.msra.mxu0 %v981_v49  ;;  %1122 = vmatprep.subr.msk.bf16.mxu1 %vm353_vm2, %v970_v48 }
 0x317   :  { %1036 = vmatpush1.bf16.msra.mxu1 %v987_v50 }
 0x319   :  { %1121 = vmatmul.mubr.msk.bf16.vlgmr.msra.gmra.mrb[8].mxu0 %vm976_vm11, %v1155_v51 }
 0x31a   :  { %1123 = vmatmul.mubr.msk.bf16.vlgmr.msra.gmra.mrb[8].mxu1 %vm976_vm11, %v1155_v51 }
 0x3ec   :  { %v1026_v52 = vpop.f32.mrb[8].mxu0 }
 0x3ed   :  { %v1027_v53 = vadd.f32 %v1026_v52, %v1292_v7  ;;  %v1069_v54 = vpop.f32.mrb[8].mxu1  ;;  %v1028_v55 = vpop.f32.mrb[9].mxu0 }
 0x3ee   :  { %v1070_v56 = vadd.f32 %v1069_v54, %v1297_v8  ;;  %v1029_v57 = vadd.f32 %v1028_v55, %v1302_v9  ;;  %v1071_v58 = vpop.f32.mrb[9].mxu1  ;;  %v1030_v24 = vpop.f32.mrb[10].mxu0 }
 0x3ef   :  { %1078 = vst [vmem:[#allocation5] sm:$0xff] %v1027_v53  ;;  %v1072_v59 = vadd.f32 %v1071_v58, %v1307_v10  ;;  %v1031_v60 = vadd.f32 %v1030_v24, %v1315_v16  ;;  %v1073_v19 = vpop.f32.mrb[10].mxu1  ;;  %v1032_v61 = vpop.f32.mrb[11].mxu0 }
 0x3f0   :  { %1080 = vst [vmem:[#allocation5 + $0x10] sm:$0xff] %v1070_v56  ;;  %1079 = vst [vmem:[#allocation5 + $0x8] sm:$0xff] %v1029_v57  ;;  %v1074_v7 = vadd.f32 %v1073_v19, %v1320_v17  ;;  %v1033_v62 = vadd.f32 %v1032_v61, %v1325_v18  ;;  %v1075_v8 = vpop.f32.mrb[11].mxu1 }
 0x3f1   :  { %1081 = vst [vmem:[#allocation5 + $0x18] sm:$0xff] %v1072_v59  ;;  %1082 = vst [vmem:[#allocation5 + $0x20] sm:$0xff] %v1031_v60  ;;  %v1076_v9 = vadd.f32 %v1075_v8, %v1331_v20 }
 0x3f2   :  { %1084 = vst [vmem:[#allocation5 + $0x30] sm:$0xff] %v1074_v7  ;;  %1083 = vst [vmem:[#allocation5 + $0x28] sm:$0xff] %v1033_v62 }
 0x3f3   :  { %1085 = vst [vmem:[#allocation5 + $0x38] sm:$0xff] %v1076_v9 }
 0x3f4   :  { %1189 = shalt.err (!%p1186_p12)
}
 0x3f5   :  { %s1190_s5 = scalar_lea.hbm %s1591_s6, 1024 }
 0x3f6   :  { %p1191_p13 = scmp.ne.s32.totalorder %s1591_s6, %s1190_s5  ;;  %p1194_p0 = scmp.lt.u32.totalorder %s1190_s5, %s1591_s6 }
 0x3f8   :  { %p1196_p1 = pnand %p1194_p0, %p1191_p13 }
 0x3fa   :  { %1199 = shalt.err (!%p1196_p1)
}
 0x3fb   :  { %1097 = dma.vmem_to_hbm [thread:$0]  %s1092_s3, 1024, %s1591_s6, [#allocation4], %s1205_s7, %s1205_s7, %s1206_s8  }
 0x3fc   :  { %1202 = dma.done.wait [#allocation4], 1024  }
 0x3fd   :  { %1203 = vsyncadd [#allocation4], 4294966272 }
 0x3fe   :  { %1101 = vsyncpa [#allocation3], 1 }
 0x3ff   :  { %1102 = vsyncpa [#allocation4], 1 }

</bundles_post_ra>
